<compile_context>
chip_gen: v5e
topology: v5e:2x2
jax: 0.10.0
libtpu: 0.0.40
codegen_flags: <defaults>
</compile_context>

<pallas_src>
import jax
import jax.numpy as jnp
from jax.experimental import pallas as pl
from jax.experimental.pallas import tpu as pltpu  # noqa: F401  (TPU-specific tuning hooks)


def _gcn_kernel(feat_ref, w_ref, b_ref, out_ref):
    # feat_ref: (1, K)  flattened conv weight (the "feature"), f32
    # w_ref:    (N, K)  nn.Linear weight in PyTorch layout (no host/in-kernel transpose)
    # b_ref:    (N, 1)  bias, already column-shaped
    # out_ref:  (N, 1)  sigmoid(feature @ W.T + b), already in the torch output layout
    #
    # M == 1, so skip the MXU entirely: sublane-broadcast the feature row against the
    # weight, VPU elementwise multiply, XLU lane reduction -> (N, 1) natively.
    prod = w_ref[...] * feat_ref[...]                 # (N, K) via (1, K) sublane broadcast
    logits = jnp.sum(prod, axis=1, keepdims=True)     # (N, 1) cross-lane reduce
    out_ref[...] = jax.nn.sigmoid(logits + b_ref[...])


def _gcn_pallas(feature, lin_w, b_col):
    output_dim, input_dim = lin_w.shape
    return pl.pallas_call(
        _gcn_kernel,
        out_shape=jax.ShapeDtypeStruct((output_dim, 1), jnp.float32),
        in_specs=[
            pl.BlockSpec((1, input_dim), lambda: (0, 0)),
            pl.BlockSpec((output_dim, input_dim), lambda: (0, 0)),
            pl.BlockSpec((output_dim, 1), lambda: (0, 0)),
        ],
        out_specs=pl.BlockSpec((output_dim, 1), lambda: (0, 0)),
    )(feature, lin_w, b_col)


def gcn_net_forward_from_feature(feature, lin_w, lin_b):
    """Fast path when the caller already holds the flattened (1, input_dim) feature."""
    output_dim, input_dim = lin_w.shape
    assert feature.shape == (1, input_dim), (feature.shape, input_dim)
    b_col = lin_b.reshape(output_dim, 1).astype(jnp.float32)
    return _gcn_pallas(feature.astype(jnp.float32),
                       lin_w.astype(jnp.float32), b_col)


@jax.jit
def gcn_net_forward(conv_weight, lin_w, lin_b):
    """conv_weight: (O, I, KH, KW) float32
       lin_w:       (output_dim, input_dim) float32  (PyTorch nn.Linear layout)
       lin_b:       (output_dim,) float32
       returns:     (output_dim, 1) float32 == sigmoid(flatten(conv_weight) @ W.T + b)
    """
    # Row-major flatten exactly as torch.reshape on a contiguous OIHW tensor.
    # NOTE: this is a relayout op on TPU tiled storage (not free); it is hoisted into
    # this single jit so it is scheduled once alongside the pallas_call.
    feature = conv_weight.reshape(1, -1)
    return gcn_net_forward_from_feature(feature, lin_w, lin_b)


if __name__ == "__main__":
    key = jax.random.PRNGKey(0)
    k_cw, k_w, k_b = jax.random.split(key, 3)

    # Small synthetic "conv1" weight: (out_ch=4, in_ch=4, kh=4, kw=4)
    O, I, KH, KW = 4, 4, 4, 4
    conv_weight = jax.random.normal(k_cw, (O, I, KH, KW), jnp.float32)

    input_dim = O * I * KH * KW          # 256  (GcnNet.input_dim)
    output_dim = 32                      # GcnNet.output_dim

    # Deterministic nn.Linear-style init: U(-1/sqrt(in), 1/sqrt(in))
    bound = 1.0 / jnp.sqrt(jnp.float32(input_dim))
    lin_w = jax.random.uniform(k_w, (output_dim, input_dim), jnp.float32,
                               minval=-bound, maxval=bound)
    lin_b = jax.random.uniform(k_b, (output_dim,), jnp.float32,
                               minval=-bound, maxval=bound)

    logits = gcn_net_forward(conv_weight, lin_w, lin_b)
    jax.block_until_ready(logits)

    # Reference check in plain JAX (same math as the PyTorch module).
    feat = conv_weight.reshape(1, -1)
    ref = jax.nn.sigmoid(feat @ lin_w.T + lin_b).reshape(-1, 1)
    assert logits.shape == (output_dim, 1), logits.shape
    assert jnp.allclose(logits, ref, atol=1e-5, rtol=1e-5)

    print("KERNEL_OK")
</pallas_src>

<mosaic_0001>
module attributes {stable_mosaic.version = 11 : i64} {
  func.func @_gcn_kernel(%arg0: memref<1x256xf32, #tpu.memory_space<vmem>>, %arg1: memref<32x256xf32, #tpu.memory_space<vmem>>, %arg2: memref<32x1xf32, #tpu.memory_space<vmem>>, %arg3: memref<32x1xf32, #tpu.memory_space<vmem>>) attributes {dimension_semantics = [], scalar_prefetch = 0 : i64, scratch_operands = 0 : i64, tpu.core_type = #tpu.core_type<tc>} {
    %c0 = arith.constant 0 : index
    %c0_0 = arith.constant 0 : index
    %0 = vector.load %arg1[%c0, %c0_0] : memref<32x256xf32, #tpu.memory_space<vmem>>, vector<32x256xf32>
    %c0_1 = arith.constant 0 : index
    %c0_2 = arith.constant 0 : index
    %1 = vector.load %arg0[%c0_1, %c0_2] : memref<1x256xf32, #tpu.memory_space<vmem>>, vector<1x256xf32>
    %2 = vector.broadcast %1 : vector<1x256xf32> to vector<32x256xf32>
    %3 = arith.mulf %0, %2 : vector<32x256xf32>
    %cst = arith.constant dense<0.000000e+00> : vector<32xf32>
    %4 = vector.multi_reduction <add>, %3, %cst [1] : vector<32x256xf32> to vector<32xf32>
    %5 = vector.shape_cast %4 : vector<32xf32> to vector<32x1xf32>
    %c0_3 = arith.constant 0 : index
    %c0_4 = arith.constant 0 : index
    %6 = vector.load %arg2[%c0_3, %c0_4] : memref<32x1xf32, #tpu.memory_space<vmem>>, vector<32x1xf32>
    %7 = arith.addf %5, %6 : vector<32x1xf32>
    %8 = arith.negf %7 : vector<32x1xf32>
    %9 = math.exp %8 : vector<32x1xf32>
    %cst_5 = arith.constant 1.000000e+00 : f32
    %10 = vector.broadcast %cst_5 : f32 to vector<32x1xf32>
    %11 = arith.addf %10, %9 : vector<32x1xf32>
    %12 = arith.divf %10, %11 : vector<32x1xf32>
    %c0_6 = arith.constant 0 : index
    %c0_7 = arith.constant 0 : index
    %13 = vector.load %arg3[%c0_6, %c0_7] : memref<32x1xf32, #tpu.memory_space<vmem>>, vector<32x1xf32>
    tpu.vector_store %arg3[%c0_6, %c0_7], %12 {strides = array<i32>} : memref<32x1xf32, #tpu.memory_space<vmem>>, vector<32x1xf32>,
    return
  }
}

</mosaic_0001>

<bundles_post_ra>
// kernel: gcn_net_forward.1
= control target key start
LH: loop header
LB: loop body
LE: loop exit
PB: predicated region body
PF: predicated region fallthrough
CT: control target
= control target key end

     0   :  { %vm132_vm3 = vcmask 7168   ;;  %s236_s0 = inlined_call_operand.vmem [shape: f32[1,256], index: 0, kind: input, shape index: {}]   ;;  %s237_s1 = inlined_call_operand.vmem [shape: f32[32,256], index: 1, kind: input, shape index: {}]   ;;  %s238_s2 = inlined_call_operand.vmem [shape: f32[32,1], index: 2, kind: input, shape index: {}]   ;;  %s239_s3 = inlined_call_operand.vmem [shape: f32[32,1], index: 3, kind: output, shape index: {}]  }
   0x1   :  { %v18_v0 = vld [vmem:[%s237_s1 + $0x20] sm:$0xff]  ;;  %v19_v1 = vld [vmem:[%s237_s1 + $0x28] sm:$0xff]  ;;  %v20_v11 = vld [vmem:[%s237_s1 + $0x30] sm:$0xff] }
   0x2   :  { %v22_v2 = vld [vmem:[%s236_s0] sm:$0x3]  ;;  %v15_v6 = vld [vmem:[%s237_s1 + $0x8] sm:$0xff]  ;;  %v21_v12 = vld [vmem:[%s237_s1 + $0x38] sm:$0xff] }
   0x3   :  { %v24_v3 = vperm.slane %v22_v2, 0  ;;  %v25_v4 = vperm.slane %v22_v2, 1  ;;  %v14_v5 = vld [vmem:[%s237_s1] sm:$0xff]  ;;  %v16_v13 = vld [vmem:[%s237_s1 + $0x10] sm:$0xff]  ;;  %v17_v14 = vld [vmem:[%s237_s1 + $0x18] sm:$0xff] }
   0x4   :  { %v50_v23 = vld [vmem:[%s238_s2 + $0x10] sm:$0xff]  ;;  %v48_v24 = vld [vmem:[%s238_s2] sm:$0xff]  ;;  %v51_v31 = vld [vmem:[%s238_s2 + $0x18] sm:$0xff] }
   0x5   :  { %v32_v7 = vmul.f32 %v24_v3, %v18_v0  ;;  %v33_v8 = vmul.f32 %v25_v4, %v19_v1  ;;  %v28_v9 = vmul.f32 %v24_v3, %v14_v5  ;;  %v29_v10 = vmul.f32 %v25_v4, %v15_v6  ;;  %v49_v32 = vld [vmem:[%s238_s2 + $0x8] sm:$0xff] }
   0x6   :  { %v34_v17 = vmul.f32 %v24_v3, %v20_v11  ;;  %v35_v18 = vmul.f32 %v25_v4, %v21_v12  ;;  %v30_v19 = vmul.f32 %v24_v3, %v16_v13  ;;  %v31_v20 = vmul.f32 %v25_v4, %v17_v14 }
   0x7   :  { %v42_v15 = vadd.f32 %v33_v8, %v32_v7  ;;  %v36_v16 = vadd.f32 %v29_v10, %v28_v9 }
   0x8   :  { %v45_v21 = vadd.f32 %v35_v18, %v34_v17  ;;  %v39_v22 = vadd.f32 %v31_v20, %v30_v19 }
   0x9   :  { %43 = vadd.xlane.f32.xlu1 %v42_v15  ;;  %37 = vadd.xlane.f32.xlu0 %v36_v16 }
  0x11   :  { %46 = vadd.xlane.f32.xlu1 %v45_v21  ;;  %40 = vadd.xlane.f32.xlu0 %v39_v22 }
  0x7c   :  { %v44_v25 = vpop.xlane.xlu1 %43  ;;  %v38_v26 = vpop.xlane.xlu0 %37 }
  0x7d   :  { %v54_v27 = vadd.f32 %v50_v23, %v44_v25  ;;  %v52_v28 = vadd.f32 %v48_v24, %v38_v26 }
  0x7f   :  { %v143_v29 = vmul.f32 -1.442695, %v54_v27  ;;  %v141_v30 = vmul.f32 -1.442695, %v52_v28 }
  0x81   :  { %145 = vpow2.f32 %v143_v29 }
  0x82   :  { %147 = vpow2.f32 %v141_v30 }
  0x84   :  { %v47_v33 = vpop.xlane.xlu1 %46  ;;  %v41_v34 = vpop.xlane.xlu0 %40 }
  0x85   :  { %v55_v35 = vadd.f32 %v51_v31, %v47_v33  ;;  %v53_v36 = vadd.f32 %v49_v32, %v41_v34 }
  0x87   :  { %v146_v37 = vpop.eup %145  ;;  %v144_v38 = vmul.f32 -1.442695, %v55_v35  ;;  %v142_v41 = vmul.f32 -1.442695, %v53_v36 }
  0x88   :  { %v148_v39 = vpop.eup %147  ;;  %v70_v40 = vadd.f32 1.0, %v146_v37 }
  0x89   :  { %v68_v42 = vadd.f32 1.0, %v148_v39  ;;  %149 = vpow2.f32 %v144_v38 }
  0x8a   :  { %151 = vrcp.f32 %v70_v40  ;;  %v111_v52 = vand.u32 2147483647, %v70_v40  ;;  %v113_v53 = vand.u32 2147483648, %v70_v40  ;;  %vm107_vm2 = vweird.f32 %v70_v40 }
  0x8b   :  { %153 = vrcp.f32 %v68_v42  ;;  %v83_v56 = vand.u32 2147483648, %v68_v42  ;;  %v81_v58 = vand.u32 2147483647, %v68_v42  ;;  %vm77_vm5 = vweird.f32 %v68_v42 }
  0x8c   :  { %155 = vpow2.f32 %v142_v41  ;;  %v114_v61 = vor.u32 1.1754944e-38, %v113_v53  ;;  %vm112_vm6 = vcmp.eq.f32.partialorder %v111_v52, 8.507059e+37 }
  0x8d   :  { %v84_v0 = vor.u32 1.1754944e-38, %v83_v56  ;;  %vm82_vm8 = vcmp.eq.f32.partialorder %v81_v58, 8.507059e+37 }
  0x8f   :  { %v150_v43 = vpop.eup %149 }
  0x90   :  { %v152_v44 = vpop.eup %151  ;;  %v71_v45 = vadd.f32 1.0, %v150_v43 }
  0x91   :  { %v154_v46 = vpop.eup %153  ;;  %v103_v47 = vmul.f32 %v152_v44, %v70_v40  ;;  %vm108_vm0 = vweird.f32 %v152_v44 }
  0x92   :  { %v156_v48 = vpop.eup %155  ;;  %v73_v49 = vmul.f32 %v154_v46, %v68_v42  ;;  %157 = vrcp.f32 %v71_v45  ;;  %vm78_vm1 = vweird.f32 %v154_v46  ;;  %vm109_vm4 = vmor %vm107_vm2, %vm108_vm0  ;;  %v128_v7 = vand.u32 2147483648, %v71_v45 }
  0x93   :  { %v104_v50 = vsub.f32 1.0, %v103_v47  ;;  %v69_v51 = vadd.f32 1.0, %v156_v48  ;;  %vm79_vm7 = vmor %vm77_vm5, %vm78_vm1  ;;  %v126_v10 = vand.u32 2147483647, %v71_v45  ;;  %vm122_vm10 = vweird.f32 %v71_v45 }
  0x94   :  { %v74_v54 = vsub.f32 1.0, %v73_v49  ;;  %v129_v14 = vor.u32 1.1754944e-38, %v128_v7 }
  0x95   :  { %v105_v55 = vmul.f32 %v152_v44, %v104_v50  ;;  %159 = vrcp.f32 %v69_v51  ;;  %v98_v13 = vand.u32 2147483648, %v69_v51  ;;  %v96_v16 = vand.u32 2147483647, %v69_v51 }
  0x96   :  { %v75_v57 = vmul.f32 %v154_v46, %v74_v54  ;;  %vm127_vm13 = vcmp.eq.f32.partialorder %v126_v10, 8.507059e+37  ;;  %vm92_vm14 = vweird.f32 %v69_v51 }
  0x97   :  { %v106_v59 = vadd.f32 %v152_v44, %v105_v55  ;;  %v99_v20 = vor.u32 1.1754944e-38, %v98_v13  ;;  %vm97_vm0 = vcmp.eq.f32.partialorder %v96_v16, 8.507059e+37 }
  0x98   :  { %v158_v60 = vpop.eup %157  ;;  %v76_v62 = vadd.f32 %v154_v46, %v75_v57 }
  0x99   :  { %v110_v63 = vsel %vm109_vm4, %v152_v44, %v106_v59  ;;  %v118_v1 = vmul.f32 %v158_v60, %v71_v45  ;;  %vm123_vm9 = vweird.f32 %v158_v60 }
  0x9a   :  { %v115_v2 = vsel %vm112_vm6, %v114_v61, %v110_v63  ;;  %v80_v3 = vsel %vm79_vm7, %v154_v46, %v76_v62  ;;  %vm124_vm11 = vmor %vm122_vm10, %vm123_vm9 }
  0x9b   :  { %v160_v4 = vpop.eup %159  ;;  %135 = vst.msk [vmem:[%s239_s3 + $0x10] sm:$0xff] %vm132_vm3, %v115_v2  ;;  %v85_v5 = vsel %vm82_vm8, %v84_v0, %v80_v3  ;;  %v119_v6 = vsub.f32 1.0, %v118_v1 }
  0x9c   :  { %133 = vst.msk [vmem:[%s239_s3] sm:$0xff] %vm132_vm3, %v85_v5  ;;  %v88_v8 = vmul.f32 %v160_v4, %v69_v51  ;;  %vm93_vm12 = vweird.f32 %v160_v4 }
  0x9d   :  { %v120_v9 = vmul.f32 %v158_v60, %v119_v6  ;;  %vm94_vm15 = vmor %vm92_vm14, %vm93_vm12 }
  0x9e   :  { %v89_v11 = vsub.f32 1.0, %v88_v8 }
  0x9f   :  { %v121_v12 = vadd.f32 %v158_v60, %v120_v9 }
  0xa0   :  { %v90_v15 = vmul.f32 %v160_v4, %v89_v11 }
  0xa1   :  { %v125_v17 = vsel %vm124_vm11, %v158_v60, %v121_v12 }
  0xa2   :  { %v130_v18 = vsel %vm127_vm13, %v129_v14, %v125_v17  ;;  %v91_v19 = vadd.f32 %v160_v4, %v90_v15 }
  0xa3   :  { %136 = vst.msk [vmem:[%s239_s3 + $0x18] sm:$0xff] %vm132_vm3, %v130_v18 }
  0xa4   :  { %v95_v21 = vsel %vm94_vm15, %v160_v4, %v91_v19 }
  0xa5   :  { %v100_v22 = vsel %vm97_vm0, %v99_v20, %v95_v21 }
  0xa6   :  { %134 = vst.msk [vmem:[%s239_s3 + $0x8] sm:$0xff] %vm132_vm3, %v100_v22 }

</bundles_post_ra>
